<compile_context>
chip_gen: v5e
topology: v5e:2x2
jax: 0.10.0
libtpu: 0.0.40
codegen_flags: <defaults>
</compile_context>

<pallas_src>
import functools

import jax
import jax.numpy as jnp
from jax.experimental import pallas as pl
from jax.experimental.pallas import tpu as pltpu

EPS = 1e-5


def _round_up(v, m):
    return (v + m - 1) // m * m


def _sublane_multiple(dtype):
    # f32 -> 8 rows per vreg tile, bf16 -> 16, int8/fp8 -> 32.
    return max(8, 32 // jnp.dtype(dtype).itemsize)


def _vmem_capacity_bytes():
    try:
        return int(pltpu.get_tpu_info().vmem_capacity_bytes)
    except Exception:
        return 64 << 20  # conservative fallback (v7x per-TensorCore VMEM)


def _const_spec(block_shape, index_map):
    """BlockSpec for a block whose index never changes: single-buffered."""
    try:
        return pl.BlockSpec(block_shape, index_map, pipeline_mode=pl.Buffered(1))
    except TypeError:  # older BlockSpec signature without pipeline_mode
        return pl.BlockSpec(block_shape, index_map)


def _prenorm_kernel(x_ref, w_ref, b_ref, o_ref, *, d_orig):
    # x_ref: (bm, D_pad) row tile; w_ref: (D_pad, tn) folded weight tile
    # (LayerNorm gamma already multiplied in); b_ref: (1, tn) folded bias (f32).
    x = x_ref[...].astype(jnp.float32)
    inv_d = jnp.float32(1.0 / d_orig)

    # Padded feature lanes of x are zero, so plain sums give correct moments;
    # padded rows of W are zero, so those lanes never reach the output.
    s1 = jnp.sum(x, axis=-1, keepdims=True)
    s2 = jnp.sum(x * x, axis=-1, keepdims=True)
    mean = s1 * inv_d
    var = jnp.maximum(s2 * inv_d - mean * mean, 0.0)
    xn = (x - mean) * jax.lax.rsqrt(var + EPS)

    # fn = Linear: xn @ W' + b'.  Cast activations to the weight's storage
    # dtype (bf16 weights -> native bf16 MXU matmul); accumulate in f32.
    out = jnp.dot(xn.astype(w_ref.dtype), w_ref[...],
                  preferred_element_type=jnp.float32)
    o_ref[...] = (out + b_ref[...]).astype(o_ref.dtype)


@functools.partial(jax.jit, static_argnames=("block_rows", "weight_dtype"))
def prenorm_linear(x, gamma, beta, w, bias, *, block_rows=None, weight_dtype=None):
    """PreNorm(dim, Linear(dim, dim)): x (B, N, D) -> (B, N, D)."""
    B, N, D = x.shape
    M = B * N

    x_bytes = jnp.dtype(x.dtype).itemsize
    out_bytes = x_bytes
    w_store = jnp.dtype(weight_dtype) if weight_dtype is not None else jnp.dtype(w.dtype)
    w_bytes = w_store.itemsize

    D_pad = _round_up(D, 128)
    row_mult = _sublane_multiple(x.dtype)

    # --- VMEM budget (per TensorCore; headroom for compiler scratch) --------
    vmem_cap = _vmem_capacity_bytes()            # 128 MiB v5e/v6e, 64 MiB v7x
    budget = (vmem_cap * 85) // 100

    # --- Weight residency / column tiling ------------------------------------
    w_full_bytes = D_pad * D_pad * w_bytes
    if w_full_bytes <= budget // 3:
        tn = D_pad                               # W fully resident, 1 buffer
    else:
        # Stream W as (D_pad, tn) column tiles over a second parallel axis;
        # tn >= 512 keeps the MXU fed, and it must divide D_pad.
        tn = 128
        for cand in range(1024, 127, -128):
            if D_pad % cand == 0:
                tn = cand
                break
    col_steps = D_pad // tn
    w_bufs = 1 if col_steps == 1 else 2

    # --- Row tile: as large as the (corrected) VMEM budget allows ------------
    def vmem_need(bm):
        return (w_bufs * D_pad * tn * w_bytes      # weight buffer(s)
                + 2 * tn * 4                       # bias (f32)
                + 2 * bm * D_pad * x_bytes         # x tiles (double buffered)
                + 2 * bm * tn * out_bytes          # out tiles (double buffered)
                + 2 * bm * D_pad * 4               # f32 temps (x upcast, xn)
                + bm * tn * 4)                     # f32 matmul result

    target = block_rows if block_rows is not None else (1024 if D_pad <= 1024 else 512)
    m_ceil = _round_up(M, row_mult)
    bm = row_mult
    for cand in (1024, 512, 256, 128, 64, 32, 16, 8):
        if cand % row_mult:
            continue
        if cand <= target and cand <= m_ceil and vmem_need(cand) <= budget:
            bm = cand
            break
    # Guarantee >= 2 row grid steps so v7x can shard the parallel row axis
    # across both TensorCores (an extra grid step is ~free elsewhere).
    if pl.cdiv(M, bm) < 2 and bm // 2 >= row_mult and (bm // 2) % row_mult == 0:
        bm //= 2

    M_pad = _round_up(M, bm)
    row_steps = M_pad // bm

    f32 = jnp.float32
    # Fold the LayerNorm affine into the linear layer (one O(D^2) XLA op):
    #   (xn*gamma + beta) @ W + bias == xn @ (gamma[:,None]*W) + (beta@W + bias)
    wf32 = w.astype(f32)
    w_fold = (gamma.astype(f32)[:, None] * wf32).astype(w_store)
    b_fold = beta.astype(f32) @ wf32 + bias.astype(f32)

    # --- Aligned fast path: skip pad/unpad HBM round trips when possible -----
    pad_rows = M_pad != M
    pad_feat = D_pad != D

    x2 = x.reshape(M, D)
    if pad_rows or pad_feat:
        x2 = jnp.zeros((M_pad, D_pad), x.dtype).at[:M, :D].set(x2)
    if pad_feat:
        w2 = jnp.zeros((D_pad, D_pad), w_fold.dtype).at[:D, :D].set(w_fold)
        b2 = jnp.zeros((1, D_pad), f32).at[0, :D].set(b_fold)
    else:
        w2 = w_fold
        b2 = b_fold.reshape(1, D_pad)

    cost = pl.CostEstimate(
        flops=2 * M_pad * D_pad * D_pad,
        transcendentals=M_pad,
        bytes_accessed=(2 * M_pad * D_pad * x_bytes
                        + (row_steps if col_steps > 1 else 1) * D_pad * D_pad * w_bytes
                        + D_pad * 4),
    )

    need = vmem_need(bm)
    cp_kwargs = dict(dimension_semantics=("parallel", "parallel"))
    if need > (16 << 20):  # above the most conservative scoped default (v5e)
        cp_kwargs["vmem_limit_bytes"] = int(min(budget, max(need * 5 // 4, 32 << 20)))
    compiler_params = pltpu.CompilerParams(**cp_kwargs)

    x_spec = pl.BlockSpec((bm, D_pad), lambda i, j: (i, 0))
    out_spec = pl.BlockSpec((bm, tn), lambda i, j: (i, j))
    if col_steps == 1:
        # Block index never changes across the grid: single buffer is enough.
        w_spec = _const_spec((D_pad, tn), lambda i, j: (0, j))
        b_spec = _const_spec((1, tn), lambda i, j: (0, j))
    else:
        w_spec = pl.BlockSpec((D_pad, tn), lambda i, j: (0, j))
        b_spec = pl.BlockSpec((1, tn), lambda i, j: (0, j))

    kernel = functools.partial(_prenorm_kernel, d_orig=D)

    out2 = pl.pallas_call(
        kernel,
        out_shape=jax.ShapeDtypeStruct((M_pad, D_pad), x.dtype),
        grid_spec=pltpu.PrefetchScalarGridSpec(
            num_scalar_prefetch=0,
            grid=(row_steps, col_steps),
            in_specs=[x_spec, w_spec, b_spec],
            out_specs=out_spec,
        ),
        compiler_params=compiler_params,
        cost_estimate=cost,
    )(x2, w2, b2)

    if pad_rows or pad_feat:
        out2 = out2[:M, :D]
    return out2.reshape(B, N, D)


def _reference(x, gamma, beta, w, bias):
    xf = x.astype(jnp.float32)
    mean = jnp.mean(xf, axis=-1, keepdims=True)
    var = jnp.mean((xf - mean) ** 2, axis=-1, keepdims=True)
    xn = (xf - mean) / jnp.sqrt(var + EPS)
    y = xn * gamma.astype(jnp.float32) + beta.astype(jnp.float32)
    out = y @ w.astype(jnp.float32) + bias.astype(jnp.float32)
    return out.astype(x.dtype)


if __name__ == "__main__":
    # Small shapes consistent with PreNorm over tokens: batch=2, seq=8, dim=32.
    B, N, D = 2, 8, 32
    key = jax.random.PRNGKey(0)
    kx, kg, kb, kw, kbb = jax.random.split(key, 5)

    x = jax.random.normal(kx, (B, N, D), dtype=jnp.float32)
    # nn.LayerNorm defaults are ones/zeros; perturb deterministically so the
    # affine terms are exercised.
    gamma = 1.0 + 0.1 * jax.random.normal(kg, (D,), dtype=jnp.float32)
    beta = 0.1 * jax.random.normal(kb, (D,), dtype=jnp.float32)
    # fn = Linear(D, D): weight stored as (D_in, D_out), bias (D,)
    w = jax.random.normal(kw, (D, D), dtype=jnp.float32) / jnp.sqrt(D)
    bias = 0.1 * jax.random.normal(kbb, (D,), dtype=jnp.float32)

    out = prenorm_linear(x, gamma, beta, w, bias)
    out = jax.block_until_ready(out)

    ref = _reference(x, gamma, beta, w, bias)
    assert out.shape == (B, N, D)
    assert jnp.allclose(out, ref, atol=2e-4, rtol=2e-4), (
        float(jnp.max(jnp.abs(out - ref))))

    print("KERNEL_OK")
</pallas_src>

<mosaic_0001>
module attributes {stable_mosaic.version = 11 : i64} {
  func.func @_prenorm_kernel(%arg0: i32, %arg1: i32, %arg2: memref<8x128xf32, #tpu.memory_space<vmem>>, %arg3: memref<128x128xf32, #tpu.memory_space<vmem>>, %arg4: memref<1x128xf32, #tpu.memory_space<vmem>>, %arg5: memref<8x128xf32, #tpu.memory_space<vmem>>) attributes {dimension_semantics = [#tpu.dimension_semantics<parallel>, #tpu.dimension_semantics<parallel>], iteration_bounds = array<i64: 2, 1>, scalar_prefetch = 0 : i64, scratch_operands = 0 : i64, tpu.core_type = #tpu.core_type<tc>, window_params = [{transform_indices = @transform_0, window_bounds = array<i64: 8, 128>}, {pipeline_mode = #tpu.pipeline_mode<synchronous>, transform_indices = @transform_1, window_bounds = array<i64: 128, 128>}, {pipeline_mode = #tpu.pipeline_mode<synchronous>, transform_indices = @transform_2, window_bounds = array<i64: 1, 128>}, {transform_indices = @transform_3, window_bounds = array<i64: 8, 128>}]} {
    %c0 = arith.constant 0 : index
    %c0_0 = arith.constant 0 : index
    %0 = vector.load %arg2[%c0, %c0_0] : memref<8x128xf32, #tpu.memory_space<vmem>>, vector<8x128xf32>
    %cst = arith.constant dense<0.000000e+00> : vector<8xf32>
    %1 = vector.multi_reduction <add>, %0, %cst [1] : vector<8x128xf32> to vector<8xf32>
    %2 = vector.shape_cast %1 : vector<8xf32> to vector<8x1xf32>
    %3 = arith.mulf %0, %0 : vector<8x128xf32>
    %cst_1 = arith.constant dense<0.000000e+00> : vector<8xf32>
    %4 = vector.multi_reduction <add>, %3, %cst_1 [1] : vector<8x128xf32> to vector<8xf32>
    %5 = vector.shape_cast %4 : vector<8xf32> to vector<8x1xf32>
    %cst_2 = arith.constant 3.125000e-02 : f32
    %6 = vector.broadcast %cst_2 : f32 to vector<8x1xf32>
    %7 = arith.mulf %2, %6 : vector<8x1xf32>
    %cst_3 = arith.constant 3.125000e-02 : f32
    %8 = vector.broadcast %cst_3 : f32 to vector<8x1xf32>
    %9 = arith.mulf %5, %8 : vector<8x1xf32>
    %10 = arith.mulf %7, %7 : vector<8x1xf32>
    %11 = arith.subf %9, %10 : vector<8x1xf32>
    %cst_4 = arith.constant 0.000000e+00 : f32
    %12 = vector.broadcast %cst_4 : f32 to vector<8x1xf32>
    %13 = arith.maximumf %11, %12 : vector<8x1xf32>
    %14 = vector.broadcast %7 : vector<8x1xf32> to vector<8x128xf32>
    %15 = arith.subf %0, %14 : vector<8x128xf32>
    %cst_5 = arith.constant 9.99999974E-6 : f32
    %16 = vector.broadcast %cst_5 : f32 to vector<8x1xf32>
    %17 = arith.addf %13, %16 : vector<8x1xf32>
    %18 = math.rsqrt %17 : vector<8x1xf32>
    %19 = vector.broadcast %18 : vector<8x1xf32> to vector<8x128xf32>
    %20 = arith.mulf %15, %19 : vector<8x128xf32>
    %c0_6 = arith.constant 0 : index
    %c0_7 = arith.constant 0 : index
    %21 = vector.load %arg3[%c0_6, %c0_7] : memref<128x128xf32, #tpu.memory_space<vmem>>, vector<128x128xf32>
    %cst_8 = arith.constant dense<0.000000e+00> : vector<8x128xf32>
    %22 = tpu.matmul %20, %21, %cst_8 {dimension_numbers = #tpu.dot_dimension_numbers<[1], [0], [0], [1], [0, 0, 1, 1], [], []>} : vector<8x128xf32>, vector<128x128xf32>, vector<8x128xf32> -> vector<8x128xf32>
    %c0_9 = arith.constant 0 : index
    %c0_10 = arith.constant 0 : index
    %23 = vector.load %arg4[%c0_9, %c0_10] : memref<1x128xf32, #tpu.memory_space<vmem>>, vector<1x128xf32>
    %24 = vector.broadcast %23 : vector<1x128xf32> to vector<8x128xf32>
    %25 = arith.addf %22, %24 : vector<8x128xf32>
    %c0_11 = arith.constant 0 : index
    %c0_12 = arith.constant 0 : index
    %26 = vector.load %arg5[%c0_11, %c0_12] : memref<8x128xf32, #tpu.memory_space<vmem>>, vector<8x128xf32>
    tpu.vector_store %arg5[%c0_11, %c0_12], %25 {strides = array<i32>} : memref<8x128xf32, #tpu.memory_space<vmem>>, vector<8x128xf32>,
    return
  }
  func.func @transform_0(%arg0: i32, %arg1: i32) -> (i32, i32) {
    %c0_i32 = arith.constant 0 : i32
    %c0_i32_0 = arith.constant 0 : i32
    return %arg0, %c0_i32 : i32, i32
  }
  func.func @transform_1(%arg0: i32, %arg1: i32) -> (i32, i32) {
    %c0_i32 = arith.constant 0 : i32
    %c0_i32_0 = arith.constant 0 : i32
    return %c0_i32, %arg1 : i32, i32
  }
  func.func @transform_2(%arg0: i32, %arg1: i32) -> (i32, i32) {
    %c0_i32 = arith.constant 0 : i32
    %c0_i32_0 = arith.constant 0 : i32
    return %c0_i32, %arg1 : i32, i32
  }
  func.func @transform_3(%arg0: i32, %arg1: i32) -> (i32, i32) {
    %c0_i32 = arith.constant 0 : i32
    return %arg0, %arg1 : i32, i32
  }
}

</mosaic_0001>

<bundles_post_ra>
// kernel: prenorm_linear.1
= control target key start
LH: loop header
LB: loop body
LE: loop exit
PB: predicated region body
PF: predicated region fallthrough
CT: control target
= control target key end

     0   :  { %s463_s12 = smov 0   ;;  %s465_s13 = smov 0   ;;  %s554_s0 = inlined_call_operand.vmem [shape: f32[16,128], index: 0, kind: input, shape index: {}]   ;;  %s555_s1 = inlined_call_operand.vmem [shape: f32[128,128], index: 1, kind: input, shape index: {}]   ;;  %s556_s2 = inlined_call_operand.vmem [shape: f32[1,128], index: 2, kind: input, shape index: {}]   ;;  %s557_s3 = inlined_call_operand.vmem [shape: f32[16,128], index: 3, kind: output, shape index: {}]  }
   0x1   :  { %s467_s14 = smov 0  }
   0x2 LB: > { %s25_s15 = sadd.s32 1, %s437_s13  ;;  %p387_p0 = scmp.ge.s32.totalorder %s441_s14, 1  ;;  %s441_s14 = sphi %s467_s14, %s13_s14   ;;  %s437_s13 = sphi %s465_s13, %s559_s13   ;;  %s433_s12 = sphi %s463_s12, %s558_s12  }
   0x3   : > { %p27_p1 = scmp.ge.s32.totalorder %s25_s15, 2  ;;  %p167_p2 = scmp.lt.s32.totalorder %s441_s14, 3 }
   0x5   : > { %s561_s15 = smov (%p27_p1, %s25_s15), 0  ;;  %p168_p3 = pnand %p387_p0, %p167_p2 }
   0x6   : > { %p199_p4 = scmp.lt.s32.totalorder (!%p168_p3), %s433_s12, 1 }
   0x7   : > { %171 = sbr.rel (%p168_p3) target bundleno = 297 (0x129), region = 32 }
   0xc   : > { %s563_s12 = smov (!%p199_p4, %s433_s12), 1  ;;  %v256_v2 = vld [vmem:[%s555_s1 + $0x78] sm:$0xff]  ;;  %v255_v3 = vld [vmem:[%s555_s1 + $0x70] sm:$0xff]  ;;  %v254_v4 = vld [vmem:[%s555_s1 + $0x68] sm:$0xff] }
   0xd   : > { %s388_s16 = sshll.u32 %s563_s12, 3  ;;  %261 = vmatpush.msra.mxu0 %v256_v2  ;;  %v253_v5 = vld [vmem:[%s555_s1 + $0x60] sm:$0xff]  ;;  %v252_v6 = vld [vmem:[%s555_s1 + $0x58] sm:$0xff]  ;;  %v251_v7 = vld [vmem:[%s555_s1 + $0x50] sm:$0xff] }
   0xe   : > { %s202_s19 = scalar_lea.vmem %s554_s0, %s388_s16  ;;  %v250_v8 = vld [vmem:[%s555_s1 + $0x48] sm:$0xff]  ;;  %v249_v9 = vld [vmem:[%s555_s1 + $0x40] sm:$0xff]  ;;  %v248_v10 = vld [vmem:[%s555_s1 + $0x38] sm:$0xff]  ;;  %s216_s7 = scalar_lea.vmem %s557_s3, %s388_s16 }
   0xf   : > { %v217_v0 = vld [vmem:[%s202_s19] sm:$0xff]  ;;  %262 = vmatpush.msra.mxu0 %v255_v3  ;;  %v247_v11 = vld [vmem:[%s555_s1 + $0x30] sm:$0xff]  ;;  %v246_v12 = vld [vmem:[%s555_s1 + $0x28] sm:$0xff] }
  0x10   : > { %218 = vadd.xlane.f32.xlu0 %v217_v0  ;;  %v220_v1 = vmul.f32 %v217_v0, %v217_v0  ;;  %v245_v13 = vld [vmem:[%s555_s1 + $0x20] sm:$0xff]  ;;  %v244_v14 = vld [vmem:[%s555_s1 + $0x18] sm:$0xff]  ;;  %v243_v15 = vld [vmem:[%s555_s1 + $0x10] sm:$0xff] }
  0x11   : > { %263 = vmatpush.msra.mxu0 %v254_v4  ;;  %v242_v16 = vld [vmem:[%s555_s1 + $0x8] sm:$0xff]  ;;  %v241_v18 = vld [vmem:[%s555_s1] sm:$0xff] }
  0x12   : > { %v416_v35 = vld [vmem:[%s556_s2] ss:$0 sm:$0xff] }
  0x13   : > { %264 = vmatpush.msra.mxu0 %v253_v5 }
  0x15   : > { %265 = vmatpush.msra.mxu0 %v252_v6 }
  0x17   : > { %266 = vmatpush.msra.mxu0 %v251_v7 }
  0x18   : > { %221 = vadd.xlane.f32.xlu0 %v220_v1 }
  0x19   : > { %267 = vmatpush.msra.mxu0 %v250_v8 }
  0x1b   : > { %268 = vmatpush.msra.mxu0 %v249_v9 }
  0x1d   : > { %269 = vmatpush.msra.mxu0 %v248_v10 }
  0x1f   : > { %270 = vmatpush.msra.mxu0 %v247_v11 }
  0x21   : > { %271 = vmatpush.msra.mxu0 %v246_v12 }
  0x23   : > { %272 = vmatpush.msra.mxu0 %v245_v13 }
  0x25   : > { %273 = vmatpush.msra.mxu0 %v244_v14 }
  0x27   : > { %274 = vmatpush.msra.mxu0 %v243_v15 }
  0x29   : > { %275 = vmatpush.msra.mxu0 %v242_v16 }
  0x2b   : > { %276 = vmatpush.msra.mxu0 %v241_v18 }
  0x83   : > { %v219_v17 = vpop.xlane.xlu0 %218 }
  0x84   : > { %v223_v19 = vmul.f32 0.03125, %v219_v17 }
  0x86   : > { %v225_v21 = vmul.f32 %v223_v19, %v223_v19  ;;  %v228_v32 = vsub.f32 %v217_v0, %v223_v19 }
  0x8b   : > { %v222_v20 = vpop.xlane.xlu0 %221 }
  0x8c   : > { %v224_v22 = vmul.f32 0.03125, %v222_v20 }
  0x8e   : > { %v226_v23 = vsub.f32 %v224_v22, %v225_v21 }
  0x90   : > { %v227_v24 = vmax.f32 %v226_v23, 0.0 }
  0x92   : > { %v229_v25 = vadd.f32 1e-05, %v227_v24 }
  0x94   : > { %417 = vrsqrt.f32 %v229_v25  ;;  %vm236_vm1 = vweird.f32 %v229_v25 }
  0x9a   : > { %v418_v26 = vpop.eup %417 }
  0x9b   : > { %v231_v27 = vmul.f32 %v418_v26, %v229_v25  ;;  %vm237_vm0 = vweird.f32 %v418_v26 }
  0x9c   : > { %vm238_vm2 = vmor %vm236_vm1, %vm237_vm0 }
  0x9d   : > { %v232_v28 = vmul.f32 %v418_v26, %v231_v27 }
  0x9f   : > { %v233_v29 = vmul.f32 0.5, %v232_v28 }
  0xa1   : > { %v234_v30 = vsub.f32 1.5, %v233_v29 }
  0xa3   : > { %v235_v31 = vmul.f32 %v418_v26, %v234_v30 }
  0xa5   : > { %v239_v33 = vsel %vm238_vm2, %v418_v26, %v235_v31 }
  0xa6   : > { %v240_v34 = vmul.f32 %v239_v33, %v228_v32 }
  0xa8   : > { %277 = vmatmul.f32.vlgmr.msra.gmra.mxu0 %v240_v34 }
 0x125   : > { %v278_v36 = vpop.f32.mrf.mxu0 }
 0x126   : > { %v279_v37 = vadd.f32 %v416_v35, %v278_v36 }
 0x128   : > { %281 = vst [vmem:[%s216_s7] sm:$0xff] %v279_v37 }
 0x129 PF: > { %s13_s14 = sadd.s32 1, %s441_s14   ;;  %s558_s12 = smov %s437_s13 }
 0x12a   : > { %p10_p5 = scmp.ge.s32.totalorder %s13_s14, 4   ;;  %s559_s13 = smov %s561_s15 }
 0x12c   :  { %12 = sbr.rel (!%p10_p5) target bundleno = 2 (0x2), region = 68 }

</bundles_post_ra>
